<compile_context>
chip_gen: v7x
topology: tpu7x:2x2x1
jax: 0.10.0
libtpu: 0.0.40
codegen_flags: <defaults>
</compile_context>

<pallas_src>
from functools import partial

import jax
import jax.numpy as jnp
from jax.experimental import pallas as pl
from jax.experimental.pallas import tpu as pltpu


def _adaptive_time_mask_kernel(x_ref, keep_ref, o_ref):
    # x_ref / o_ref : (TILE_T, F) VMEM tiles
    # keep_ref      : (TILE_T, 1) int8 — 1 = keep row, 0 = zero the row.
    keep = keep_ref[...] != 0                      # (TILE_T, 1) bool
    # Lane-broadcast select: exact zero assignment (kills NaN/Inf, no -0.0).
    o_ref[...] = jnp.where(keep, x_ref[...], 0)


def _cdiv(a, b):
    return -(-a // b)


def _round_up(n, m):
    return ((n + m - 1) // m) * m


def _pick_tile_t(T, F, x_itemsize, keep_itemsize, *,
                 vmem_budget_bytes=8 << 20, max_tile=1024, min_steps=4):
    """Largest time tile (multiple of the sublane pack) that double-buffers in VMEM."""
    # sublane packing for x dtype: f32 -> 8, bf16 -> 16, int8/fp8 -> 32
    sub = {4: 8, 2: 16, 1: 32}.get(int(x_itemsize), 8)
    # Double-buffered VMEM bytes per time row:
    #   x input : 2 buffers * F * itemsize
    #   output  : 2 buffers * F * itemsize
    #   keep    : 2 buffers * 128 lanes * keep_itemsize  (minor dim 1 lane-pads)
    per_row = 4 * F * x_itemsize + 2 * 128 * keep_itemsize
    tile = min(max_tile, max(sub, vmem_budget_bytes // per_row))
    tile = max(sub, (int(tile) // sub) * sub)
    t_up = _round_up(T, sub)              # no point exceeding (padded) T
    tile = min(tile, t_up)
    # Keep >= min_steps grid steps when T allows it: lets megacore/v7x shard
    # the time axis across TensorCores and gives the pipeline work to overlap.
    if T > sub and _cdiv(T, tile) < min_steps:
        tile = max(sub, _round_up(_cdiv(T, min_steps), sub))
    return int(tile)


def adaptive_time_mask_pallas(x, keep):
    """x: (T, F); keep: (T, 1) int8 (1 = keep row, 0 = zero row). Out-of-place."""
    T, F = x.shape
    x_itemsize = jnp.dtype(x.dtype).itemsize
    keep_itemsize = jnp.dtype(keep.dtype).itemsize
    tile_t = _pick_tile_t(T, F, x_itemsize, keep_itemsize)
    grid = (pl.cdiv(T, tile_t),)          # partial last block is masked by Pallas

    return pl.pallas_call(
        _adaptive_time_mask_kernel,
        out_shape=jax.ShapeDtypeStruct((T, F), x.dtype),
        grid=grid,
        in_specs=[
            pl.BlockSpec((tile_t, F), lambda i: (i, 0)),
            pl.BlockSpec((tile_t, 1), lambda i: (i, 0)),
        ],
        out_specs=pl.BlockSpec((tile_t, F), lambda i: (i, 0)),
        cost_estimate=pl.CostEstimate(
            flops=T * F,                                   # one select per element
            transcendentals=0,
            bytes_accessed=2 * T * F * x_itemsize + T * 128 * keep_itemsize,
        ),
        compiler_params=pltpu.CompilerParams(
            dimension_semantics=("parallel",),
        ),
    )(x, keep)


def sample_mask_intervals(key, length, window, stride):
    """Reproduces the PyTorch sampling semantics with deterministic JAX RNG.

    torch.randint(0, window) and random.randrange(0, length - t) are both
    exclusive on the upper bound, matching jax.random.randint's convention.
    The second sampled value is the mask LENGTH; the first ('t') only bounds
    t_start and gates validity (t == 0 -> skip), matching av_dataset.py.
    """
    n_mask = int((length + stride - 0.1) // stride)
    k_t, k_len, k_start = jax.random.split(key, 3)
    t = jax.random.randint(k_t, (n_mask,), 0, window)            # ts[:, 0]
    mask_len = jax.random.randint(k_len, (n_mask,), 0, window)   # ts[:, 1]
    hi = jnp.maximum(length - t, 1)                               # guard bound
    t_start = jax.random.randint(k_start, (n_mask,), 0, hi)
    # skip mask if (length - t <= 0) or (t == 0)  (matches `continue` branches)
    valid = (length - t > 0) & (t > 0)
    starts = jnp.where(valid, t_start, 0).astype(jnp.int32)
    ends = jnp.where(valid, t_start + mask_len, 0).astype(jnp.int32)
    return starts, ends


def build_keep(starts, ends, length):
    """(length, 1) int8 keep vector from half-open zero intervals (plain JAX glue)."""
    tidx = jnp.arange(length, dtype=jnp.int32)[:, None]            # (T, 1)
    covered = (tidx >= starts[None, :]) & (tidx < ends[None, :])   # (T, n_mask)
    keep = jnp.logical_not(jnp.any(covered, axis=1, keepdims=True))
    return keep.astype(jnp.int8)                                    # (T, 1) int8


@partial(jax.jit, static_argnames=("window", "stride"))
def adaptive_time_mask(x, key, window, stride):
    T = x.shape[0]
    starts, ends = sample_mask_intervals(key, T, window, stride)
    keep = build_keep(starts, ends, T)
    return adaptive_time_mask_pallas(x, keep), keep


if __name__ == "__main__":
    key = jax.random.PRNGKey(0)
    k_x, k_mask = jax.random.split(key)

    # (time, feature) — time-major frames, lane-aligned feature dim.
    T, F = 1000, 128
    window, stride = 10, 25   # module hyperparameters

    x = jax.random.normal(k_x, (T, F), dtype=jnp.float32)

    out, keep = adaptive_time_mask(x, k_mask, window, stride)
    out = jax.block_until_ready(out)

    # Reference in plain JAX (same keep vector) — masking is exact zeroing.
    ref = jnp.where(keep != 0, x, 0.0)
    assert out.shape == x.shape and out.dtype == x.dtype
    assert bool(jnp.allclose(out, ref)), "mismatch vs reference"

    # Sanity: masks can cover at most n_mask*window rows, never the whole input.
    zero_rows = int(jnp.sum(keep == 0))
    assert 0 <= zero_rows < T

    print("KERNEL_OK")
</pallas_src>

<mosaic_0001>
module attributes {stable_mosaic.version = 11 : i64} {
  func.func @_adaptive_time_mask_kernel(%arg0: i32, %arg1: memref<256x128xf32, #tpu.memory_space<vmem>>, %arg2: memref<256x1xi8, #tpu.memory_space<vmem>>, %arg3: memref<256x128xf32, #tpu.memory_space<vmem>>) attributes {dimension_semantics = [#tpu.dimension_semantics<parallel>], iteration_bounds = array<i64: 4>, scalar_prefetch = 0 : i64, scratch_operands = 0 : i64, tpu.core_type = #tpu.core_type<tc>, window_params = [{transform_indices = @transform_0, window_bounds = array<i64: 256, 128>}, {transform_indices = @transform_1, window_bounds = array<i64: 256, 1>}, {transform_indices = @transform_2, window_bounds = array<i64: 256, 128>}]} {
    %c0 = arith.constant 0 : index
    %c0_0 = arith.constant 0 : index
    %0 = vector.load %arg2[%c0, %c0_0] : memref<256x1xi8, #tpu.memory_space<vmem>>, vector<256x1xi8>
    %c0_i8 = arith.constant 0 : i8
    %1 = vector.broadcast %c0_i8 : i8 to vector<256x1xi8>
    %2 = arith.cmpi ne, %0, %1 : vector<256x1xi8>
    %c0_1 = arith.constant 0 : index
    %c0_2 = arith.constant 0 : index
    %3 = vector.load %arg1[%c0_1, %c0_2] : memref<256x128xf32, #tpu.memory_space<vmem>>, vector<256x128xf32>
    %c0_i32 = arith.constant 0 : i32
    %4 = arith.sitofp %c0_i32 : i32 to f32
    %5 = vector.shape_cast %2 : vector<256x1xi1> to vector<256x1xi1>
    %6 = vector.broadcast %5 : vector<256x1xi1> to vector<256x128xi1>
    %7 = vector.broadcast %4 : f32 to vector<256x128xf32>
    %8 = arith.select %6, %3, %7 : vector<256x128xi1>, vector<256x128xf32>
    %c0_3 = arith.constant 0 : index
    %c0_4 = arith.constant 0 : index
    %9 = vector.load %arg3[%c0_3, %c0_4] : memref<256x128xf32, #tpu.memory_space<vmem>>, vector<256x128xf32>
    tpu.vector_store %arg3[%c0_3, %c0_4], %8 {strides = array<i32>} : memref<256x128xf32, #tpu.memory_space<vmem>>, vector<256x128xf32>,
    return
  }
  func.func @transform_0(%arg0: i32) -> (i32, i32) {
    %c0_i32 = arith.constant 0 : i32
    %c0_i32_0 = arith.constant 0 : i32
    return %arg0, %c0_i32 : i32, i32
  }
  func.func @transform_1(%arg0: i32) -> (i32, i32) {
    %c0_i32 = arith.constant 0 : i32
    %c0_i32_0 = arith.constant 0 : i32
    return %arg0, %c0_i32 : i32, i32
  }
  func.func @transform_2(%arg0: i32) -> (i32, i32) {
    %c0_i32 = arith.constant 0 : i32
    %c0_i32_0 = arith.constant 0 : i32
    return %arg0, %c0_i32 : i32, i32
  }
}

</mosaic_0001>

<bundles_post_ra>
// kernel: adaptive_time_mask.1
= control target key start
LH: loop header
LB: loop body
LE: loop exit
PB: predicated region body
PF: predicated region fallthrough
CT: control target
= control target key end

     0   :  { %7 = vsyncpa [#allocation3], 0  ;;  %s1283_s0 = inlined_call_operand.hbm [shape: f32[1000,128], index: 0, kind: input, shape index: {}]   ;;  %s1284_s1 = inlined_call_operand.vmem [shape: s8[1000,1], index: 1, kind: input, shape index: {}]   ;;  %s1285_s2 = inlined_call_operand.hbm [shape: f32[1000,128], index: 2, kind: output, shape index: {}]  }
   0x1   :  { %9 = vsyncpa [#allocation3 + $0x1], 0 }
   0x2   :  { %10 = vsyncpa [#allocation4], 0 }
   0x3   :  { %12 = vsyncpa [#allocation4 + $0x1], 0  ;;  %s933_s9 = smov 0   ;;  %s935_s10 = smov 0  }
   0x4   :  { %s937_s11 = smov 0   ;;  %s939_s12 = smov 0  }
   0x5 LB: > { %s954_s13 = sadd.s32 4294967295, %s909_s12   ;;  %s743_s14 = sadd.s32 4294967294, %s909_s12   ;;  %s909_s12 = sphi %s939_s12, %s1293_s12   ;;  %s905_s11 = sphi %s937_s11, %s1292_s11   ;;  %s901_s10 = sphi %s935_s10, %s1291_s10   ;;  %s897_s9 = sphi %s933_s9, %s1290_s9  }
   0x6   : > { %s958_s15 = sadd.s32 1, %s909_s12   ;;  %s25_s16 = sadd.s32 1, %s905_s11 }
   0x7   : > { %s22_s17 = ssub.s32 %s909_s12, %s958_s15  ;;  %p32_p0 = scmp.ne.s32.totalorder %s905_s11, %s901_s10 }
   0x8   : > { %p23_p1 = scmp.eq.s32.totalorder %s22_s17, 0  ;;  %p33_p2 = scmp.eq.s32.totalorder %s909_s12, 0 }
   0x9   : > { %p38_p3 = scmp.ne.s32.totalorder %s901_s10, %s897_s9  ;;  %p39_p4 = scmp.eq.s32.totalorder %s954_s13, 0 }
   0xa   : > { %s970_s18 = scalar_select %p23_p1, %s905_s11, %s25_s16  }
   0xb   : > { %p34_p5 = por %p33_p2, %p32_p0  ;;  %p972_p6 = por %p39_p4, %p38_p3 }
   0xc   : > { %p88_p7 = scmp.eq.s32.totalorder %s954_s13, 3  ;;  %p94_p8 = scmp.eq.s32.totalorder %s743_s14, 3 }
   0xd   : > { %p745_p11 = scmp.ge.s32.totalorder %s909_s12, 4 }
   0xe   : > { %p977_p9 = por %p88_p7, %p32_p0  ;;  %p981_p10 = por %p94_p8, %p38_p3 }
   0xf   : > { %110 = sbr.rel (%p745_p11) target bundleno = 57 (0x39), region = 16 }
  0x10   : > { %s1288_s21 = scalar_select %p981_p10, 1, 0 }
  0x16   : > { %113 = sbr.rel (!%p34_p5) target bundleno = 57 (0x39), region = 20  ;;  %s114_s22 = sand.u32 (%p34_p5), 1, %s905_s11  }
  0x17   : > { %s747_s23 = sshll.u32 (%p34_p5), %s909_s12, 5  ;;  %s746_s24 = sshll.u32 (%p34_p5), %s114_s22, 8 }
  0x18   : > { %s120_s25 = ssub.s32 (%p34_p5), 125, %s747_s23  ;;  %s991_s28 = scalar_lea.sflag (%p34_p5), [#allocation3], %s114_s22 }
  0x19   : > { %p121_p12 = scmp.lt.s32.totalorder (%p34_p5), %s120_s25, 32  ;;  %s118_s29 = scalar_lea.vmem (%p34_p5), [#allocation2], %s746_s24 }
  0x1d   : > { %s1295_s25 = smov (!%p121_p12, %s120_s25), 32 }
  0x1e   : > { %s988_s26 = sshll.u32 %s1295_s25, 7 }
  0x1f   : > { %s125_s27 = ssub.s32 4096, %s988_s26 }
  0x20   : > { %126 = vsyncadd %s991_s28, %s125_s27  ;;  %p749_p13 = scmp.ne.s32.totalorder %s988_s26, 0  ;;  %s767_s30 = sshll.u32 %s909_s12, 12 }
  0x21   : > { %s999_s5 = scalar_lea.hbm %s1283_s0, %s767_s30  ;;  %s131_s6 = sshll.u32 %s118_s29, 4  ;;  %s1001_s6 = int_to_ptr.vmem [resolvable:$true] %s131_s6 }
  0x22   : > { %s815_s7 = scalar_lea.hbm %s999_s5, %s988_s26  ;;  %s819_s16 = scalar_lea.hbm %s1283_s0, 16000 }
  0x23   : > { %p816_p0 = scmp.ne.s32.totalorder %s999_s5, %s815_s7  ;;  %p820_p3 = scmp.lt.u32.totalorder %s999_s5, %s1283_s0 }
  0x24   : > { %p821_p4 = scmp.lt.u32.totalorder %s819_s16, %s815_s7  ;;  %p823_p7 = scmp.lt.u32.totalorder %s815_s7, %s999_s5 }
  0x25   : > { %p817_p1 = pnand %p816_p0, %p749_p13 }
  0x26   : > { %p822_p5 = por %p821_p4, %p820_p3 }
  0x27   : > { %p818_p2 = pneg %p817_p1 }
  0x28   : > { %p824_p8 = por %p823_p7, %p822_p5 }
  0x2a   : > { %p825_p11 = pnand %p824_p8, %p818_p2 }
  0x2c   : > { %828 = shalt.err (!%p825_p11)
}
  0x2d   : > { %s829_s23 = scalar_lea.vmem %s1001_s6, %s988_s26  ;;  %s911_s24 = smov [#allocation2]  }
  0x2e   : > { %p830_p12 = scmp.ne.s32.totalorder %s1001_s6, %s829_s23  ;;  %s833_s25 = sshll.u32 %s911_s24, 4  ;;  %s834_s25 = int_to_ptr.vmem [resolvable:$false] %s833_s25 }
  0x2f   : > { %s835_s27 = scalar_lea.vmem %s834_s25, 8192  ;;  %p836_p10 = scmp.lt.s32.totalorder %s1001_s6, %s834_s25 }
  0x30   : > { %p831_p0 = pnand %p830_p12, %p749_p13  ;;  %p837_p3 = scmp.lt.s32.totalorder %s835_s27, %s829_s23 }
  0x32   : > { %p832_p1 = pneg %p831_p0  ;;  %p838_p4 = por %p837_p3, %p836_p10 }
  0x34   : > { %p839_p5 = pnand %p838_p4, %p832_p1 }
  0x36   : > { %842 = shalt.err (!%p839_p5)
}
  0x37   : > { %s912_s29 = smov 128   ;;  %s913_s30 = smov 8  }
  0x38   : > { %137 = dma.hbm_to_vmem [thread:$0]  (%p749_p13), %s999_s5, %s988_s26, %s1001_s6, %s991_s28, %s912_s29, %s912_s29, %s913_s30  }
  0x39 PF: > { %p753_p2 = scmp.ge.s32.totalorder %s909_s12, 1  ;;  %p156_p7 = scmp.lt.s32.totalorder %s909_s12, 5 }
  0x3b   : > { %p157_p8 = pnand %p753_p2, %p156_p7 }
  0x3c   : > { %s1031_s3 = sand.u32 (!%p157_p8), 1, %s901_s10  }
  0x3d   : > { %160 = sbr.rel (%p157_p8) target bundleno = 302 (0x12e), region = 28  ;;  %s754_s4 = sshll.u32 (!%p157_p8), %s1031_s3, 8 }
  0x3e   : > { %s163_s7 = scalar_lea.sflag (!%p157_p8), [#allocation3], %s1031_s3  ;;  %s1037_s8 = scalar_lea.vmem (!%p157_p8), [#allocation2], %s754_s4 }
  0x44   : > { %888 = dma.done.wait (%p972_p6), %s163_s7, 4096  }
  0x45   : > { %890 = vsyncadd (%p972_p6), %s163_s7, 4294963200  ;;  %s1044_s26 = sshll.u32 %s954_s13, 5  ;;  %v914_v0 = vmov 0   ;;  %s1157_s19 = scalar_lea.vmem [#allocation5], %s754_s4 }
  0x46   : > { %814 = vset.pattern.permute.xlu1 %v914_v0  ;;  %813 = vset.pattern.permute.xlu0 %v914_v0  ;;  %p206_p10 = scmp.lt.s32.totalorder %s1044_s26, 124  ;;  %s639_s17 = scalar_lea.sflag [#allocation4], %s1031_s3 }
  0x47   : > { %s647_s22 = ssub.s32 (%p977_p9), 125, %s1044_s26 }
  0x48   : > { %s207_s28 = scalar_select %p206_p10, %s1044_s26, 124 }
  0x49   : > { %p648_p6 = scmp.lt.s32.totalorder (%p977_p9), %s647_s22, 32 }
  0x4a   : > { %s757_s5 = sshll.u32 %s207_s28, 1 }
  0x4b   : > { %s1053_s16 = scalar_lea.vmem %s1284_s1, %s757_s5 }
  0x4c   : > { %v224_v1 = vld [vmem:[%s1053_s16 + $0x4] sm:$0x3]  ;;  %v222_v2 = vld [vmem:[%s1053_s16] sm:$0x3]  ;;  %v225_v3 = vld [vmem:[%s1053_s16 + $0x6] sm:$0x3] }
  0x4d   : > { %vm256_vm0 = vnez %v224_v1  ;;  %vm254_vm1 = vnez %v222_v2  ;;  %vm257_vm2 = vnez %v225_v3  ;;  %v223_v4 = vld [vmem:[%s1053_s16 + $0x2] sm:$0x3]  ;;  %v227_v5 = vld [vmem:[%s1053_s16 + $0xa] sm:$0x3]  ;;  %v226_v6 = vld [vmem:[%s1053_s16 + $0x8] sm:$0x3] }
  0x4e   : > { %v320_v7 = vsel %vm256_vm0, 16843009, %v914_v0  ;;  %v318_v8 = vsel %vm254_vm1, 16843009, %v914_v0  ;;  %v321_v9 = vsel %vm257_vm2, 16843009, %v914_v0  ;;  %vm255_vm3 = vnez %v223_v4 }
  0x4f   : > { %v352_v10 = vunpack.c.0.s8 %v320_v7  ;;  %v350_v11 = vunpack.c.0.s8 %v318_v8  ;;  %v353_v12 = vunpack.c.0.s8 %v321_v9  ;;  %v319_v13 = vsel %vm255_vm3, 16843009, %v914_v0  ;;  %v229_v14 = vld [vmem:[%s1053_s16 + $0xe] sm:$0x3]  ;;  %v228_v16 = vld [vmem:[%s1053_s16 + $0xc] sm:$0x3] }
  0x50   : > { %v351_v15 = vunpack.c.0.s8 %v319_v13  ;;  %vm259_vm4 = vnez %v227_v5  ;;  %vm258_vm5 = vnez %v226_v6  ;;  %vm261_vm6 = vnez %v229_v14  ;;  %v231_v17 = vld [vmem:[%s1053_s16 + $0x12] sm:$0x3]  ;;  %v230_v21 = vld [vmem:[%s1053_s16 + $0x10] sm:$0x3]  ;;  %v233_v28 = vld [vmem:[%s1053_s16 + $0x16] sm:$0x3] }
  0x51   : > { %vm384_vm7 = vcmp.ne.s32.totalorder %v352_v10, 0  ;;  %vm382_vm8 = vcmp.ne.s32.totalorder %v350_v11, 0  ;;  %vm385_vm9 = vcmp.ne.s32.totalorder %v353_v12, 0  ;;  %v323_v18 = vsel %vm259_vm4, 16843009, %v914_v0 }
  0x52   : > { %v416_v19 = vsel %vm384_vm7, 1, %v914_v0  ;;  %v414_v20 = vsel %vm382_vm8, 1, %v914_v0  ;;  %vm383_vm10 = vcmp.ne.s32.totalorder %v351_v15, 0  ;;  %v417_v22 = vsel %vm385_vm9, 1, %v914_v0  ;;  %v232_v31 = vld [vmem:[%s1053_s16 + $0x14] sm:$0x3] }
  0x53   : > { %453 = vperm.xlu1 %814, %v416_v19   ;;  %447 = vperm.xlu0 %813, %v414_v20   ;;  %v355_v23 = vunpack.c.0.s8 %v323_v18  ;;  %v322_v24 = vsel %vm258_vm5, 16843009, %v914_v0  ;;  %v325_v25 = vsel %vm261_vm6, 16843009, %v914_v0  ;;  %v415_v26 = vsel %vm383_vm10, 1, %v914_v0 }
  0x54   : > { %v354_v27 = vunpack.c.0.s8 %v322_v24  ;;  %vm260_vm11 = vnez %v228_v16  ;;  %vm263_vm12 = vnez %v231_v17  ;;  %v357_v29 = vunpack.c.0.s8 %v325_v25  ;;  %v235_v37 = vld [vmem:[%s1053_s16 + $0x1a] sm:$0x3]  ;;  %v234_v38 = vld [vmem:[%s1053_s16 + $0x18] sm:$0x3]  ;;  %v237_v45 = vld [vmem:[%s1053_s16 + $0x1e] sm:$0x3] }
  0x55   : > { %vm387_vm13 = vcmp.ne.s32.totalorder %v355_v23, 0  ;;  %v324_v30 = vsel %vm260_vm11, 16843009, %v914_v0  ;;  %vm262_vm14 = vnez %v230_v21  ;;  %v327_v33 = vsel %vm263_vm12, 16843009, %v914_v0 }
  0x56   : > { %vm386_vm15 = vcmp.ne.s32.totalorder %v354_v27, 0  ;;  %v356_v32 = vunpack.c.0.s8 %v324_v30  ;;  %v326_v34 = vsel %vm262_vm14, 16843009, %v914_v0  ;;  %v419_v35 = vsel %vm387_vm13, 1, %v914_v0  ;;  %v236_v46 = vld [vmem:[%s1053_s16 + $0x1c] sm:$0x3] }
  0x57   : > { %456 = vperm.xlu1 %814, %v417_v22   ;;  %450 = vperm.xlu0 %813, %v415_v26   ;;  %v418_v36 = vsel %vm386_vm15, 1, %v914_v0  ;;  %vm265_vm0 = vnez %v233_v28  ;;  %vm264_vm1 = vnez %v232_v31  ;;  %vm389_vm2 = vcmp.ne.s32.totalorder %v357_v29, 0  ;;  %v239_v53 = vld [vmem:[%s1053_s16 + $0x22] sm:$0x3]  ;;  %v238_v54 = vld [vmem:[%s1053_s16 + $0x20] sm:$0x3] }
  0x58   : > { %vm388_vm3 = vcmp.ne.s32.totalorder %v356_v32, 0  ;;  %v359_v39 = vunpack.c.0.s8 %v327_v33  ;;  %v358_v40 = vunpack.c.0.s8 %v326_v34  ;;  %v329_v41 = vsel %vm265_vm0, 16843009, %v914_v0  ;;  %v241_v61 = vld [vmem:[%s1053_s16 + $0x26] sm:$0x3] }
  0x59   : > { %v328_v42 = vsel %vm264_vm1, 16843009, %v914_v0  ;;  %vm267_vm4 = vnez %v235_v37  ;;  %vm266_vm5 = vnez %v234_v38  ;;  %v421_v43 = vsel %vm389_vm2, 1, %v914_v0  ;;  %v240_v62 = vld [vmem:[%s1053_s16 + $0x24] sm:$0x3] }
  0x5a   : > { %v420_v44 = vsel %vm388_vm3, 1, %v914_v0  ;;  %vm391_vm6 = vcmp.ne.s32.totalorder %v359_v39, 0  ;;  %vm390_vm7 = vcmp.ne.s32.totalorder %v358_v40, 0  ;;  %v361_v47 = vunpack.c.0.s8 %v329_v41  ;;  %v243_v6 = vld [vmem:[%s1053_s16 + $0x2a] sm:$0x3] }
  0x5b   : > { %462 = vperm.xlu1 %814, %v419_v35   ;;  %459 = vperm.xlu0 %813, %v418_v36   ;;  %v360_v48 = vunpack.c.0.s8 %v328_v42  ;;  %v331_v49 = vsel %vm267_vm4, 16843009, %v914_v0  ;;  %v330_v50 = vsel %vm266_vm5, 16843009, %v914_v0  ;;  %vm269_vm8 = vnez %v237_v45  ;;  %v242_v7 = vld [vmem:[%s1053_s16 + $0x28] sm:$0x3] }
  0x5c   : > { %vm268_vm9 = vnez %v236_v46  ;;  %v423_v51 = vsel %vm391_vm6, 1, %v914_v0  ;;  %v422_v52 = vsel %vm390_vm7, 1, %v914_v0  ;;  %vm393_vm10 = vcmp.ne.s32.totalorder %v361_v47, 0  ;;  %v245_v14 = vld [vmem:[%s1053_s16 + $0x2e] sm:$0x3] }
  0x5d   : > { %vm392_vm11 = vcmp.ne.s32.totalorder %v360_v48, 0  ;;  %v363_v55 = vunpack.c.0.s8 %v331_v49  ;;  %v362_v56 = vunpack.c.0.s8 %v330_v50  ;;  %v333_v57 = vsel %vm269_vm8, 16843009, %v914_v0  ;;  %v244_v15 = vld [vmem:[%s1053_s16 + $0x2c] sm:$0x3] }
  0x5e   : > { %v332_v58 = vsel %vm268_vm9, 16843009, %v914_v0  ;;  %vm271_vm12 = vnez %v239_v53  ;;  %vm270_vm13 = vnez %v238_v54  ;;  %v425_v59 = vsel %vm393_vm10, 1, %v914_v0  ;;  %v247_v22 = vld [vmem:[%s1053_s16 + $0x32] sm:$0x3] }
  0x5f   : > { %468 = vperm.xlu1 %814, %v421_v43   ;;  %465 = vperm.xlu0 %813, %v420_v44   ;;  %v424_v60 = vsel %vm392_vm11, 1, %v914_v0  ;;  %vm395_vm14 = vcmp.ne.s32.totalorder %v363_v55, 0  ;;  %vm394_vm15 = vcmp.ne.s32.totalorder %v362_v56, 0  ;;  %v365_v63 = vunpack.c.0.s8 %v333_v57  ;;  %v246_v23 = vld [vmem:[%s1053_s16 + $0x30] sm:$0x3] }
  0x60   : > { %v364_v1 = vunpack.c.0.s8 %v332_v58  ;;  %v335_v2 = vsel %vm271_vm12, 16843009, %v914_v0  ;;  %v334_v3 = vsel %vm270_vm13, 16843009, %v914_v0  ;;  %vm273_vm0 = vnez %v241_v61  ;;  %v249_v30 = vld [vmem:[%s1053_s16 + $0x36] sm:$0x3] }
  0x61   : > { %vm272_vm1 = vnez %v240_v62  ;;  %v427_v4 = vsel %vm395_vm14, 1, %v914_v0  ;;  %v426_v5 = vsel %vm394_vm15, 1, %v914_v0  ;;  %vm397_vm2 = vcmp.ne.s32.totalorder %v365_v63, 0  ;;  %v248_v31 = vld [vmem:[%s1053_s16 + $0x34] sm:$0x3] }
  0x62   : > { %vm396_vm3 = vcmp.ne.s32.totalorder %v364_v1, 0  ;;  %v367_v8 = vunpack.c.0.s8 %v335_v2  ;;  %v366_v9 = vunpack.c.0.s8 %v334_v3  ;;  %v337_v10 = vsel %vm273_vm0, 16843009, %v914_v0  ;;  %v251_v38 = vld [vmem:[%s1053_s16 + $0x3a] sm:$0x3]  ;;  %v288_v3 = vld [vmem:[%s1037_s8 + $0x10] sm:$0xff] }
  0x63   : > { %474 = vperm.xlu1 %814, %v423_v51   ;;  %471 = vperm.xlu0 %813, %v422_v52   ;;  %v336_v11 = vsel %vm272_vm1, 16843009, %v914_v0  ;;  %vm275_vm4 = vnez %v243_v6  ;;  %vm274_vm5 = vnez %v242_v7  ;;  %v429_v12 = vsel %vm397_vm2, 1, %v914_v0  ;;  %v250_v39 = vld [vmem:[%s1053_s16 + $0x38] sm:$0x3] }
  0x64   : > { %v428_v13 = vsel %vm396_vm3, 1, %v914_v0  ;;  %vm399_vm6 = vcmp.ne.s32.totalorder %v367_v8, 0  ;;  %vm398_vm7 = vcmp.ne.s32.totalorder %v366_v9, 0  ;;  %v369_v16 = vunpack.c.0.s8 %v337_v10  ;;  %v253_v46 = vld [vmem:[%s1053_s16 + $0x3e] sm:$0x3]  ;;  %v287_v9 = vld [vmem:[%s1037_s8 + $0x8] sm:$0xff] }
  0x65   : > { %v368_v17 = vunpack.c.0.s8 %v336_v11  ;;  %v339_v18 = vsel %vm275_vm4, 16843009, %v914_v0  ;;  %v338_v19 = vsel %vm274_vm5, 16843009, %v914_v0  ;;  %vm277_vm8 = vnez %v245_v14  ;;  %v252_v47 = vld [vmem:[%s1053_s16 + $0x3c] sm:$0x3] }
  0x66   : > { %vm276_vm9 = vnez %v244_v15  ;;  %v431_v20 = vsel %vm399_vm6, 1, %v914_v0  ;;  %v430_v21 = vsel %vm398_vm7, 1, %v914_v0  ;;  %vm401_vm10 = vcmp.ne.s32.totalorder %v369_v16, 0  ;;  %v291_v14 = vld [vmem:[%s1037_s8 + $0x28] sm:$0xff]  ;;  %v290_v15 = vld [vmem:[%s1037_s8 + $0x20] sm:$0xff] }
  0x67   : > { %480 = vperm.xlu1 %814, %v425_v59   ;;  %477 = vperm.xlu0 %813, %v424_v60   ;;  %vm400_vm11 = vcmp.ne.s32.totalorder %v368_v17, 0  ;;  %v371_v24 = vunpack.c.0.s8 %v339_v18  ;;  %v370_v25 = vunpack.c.0.s8 %v338_v19  ;;  %v341_v26 = vsel %vm277_vm8, 16843009, %v914_v0 }
  0x68   : > { %v340_v27 = vsel %vm276_vm9, 16843009, %v914_v0  ;;  %vm279_vm12 = vnez %v247_v22  ;;  %vm278_vm13 = vnez %v246_v23  ;;  %v433_v28 = vsel %vm401_vm10, 1, %v914_v0 }
  0x69   : > { %v432_v29 = vsel %vm400_vm11, 1, %v914_v0  ;;  %vm403_vm14 = vcmp.ne.s32.totalorder %v371_v24, 0  ;;  %vm402_vm15 = vcmp.ne.s32.totalorder %v370_v25, 0  ;;  %v373_v32 = vunpack.c.0.s8 %v341_v26  ;;  %v295_v26 = vld [vmem:[%s1037_s8 + $0x48] sm:$0xff] }
  0x6a   : > { %v372_v33 = vunpack.c.0.s8 %v340_v27  ;;  %v343_v34 = vsel %vm279_vm12, 16843009, %v914_v0  ;;  %v342_v35 = vsel %vm278_vm13, 16843009, %v914_v0  ;;  %vm281_vm0 = vnez %v249_v30  ;;  %v294_v27 = vld [vmem:[%s1037_s8 + $0x40] sm:$0xff] }
  0x6b   : > { %486 = vperm.xlu1 %814, %v427_v4   ;;  %483 = vperm.xlu0 %813, %v426_v5   ;;  %vm280_vm1 = vnez %v248_v31  ;;  %v435_v36 = vsel %vm403_vm14, 1, %v914_v0  ;;  %v434_v37 = vsel %vm402_vm15, 1, %v914_v0  ;;  %vm405_vm2 = vcmp.ne.s32.totalorder %v373_v32, 0  ;;  %v286_v4 = vld [vmem:[%s1037_s8] sm:$0xff]  ;;  %v297_v32 = vld [vmem:[%s1037_s8 + $0x58] sm:$0xff] }
  0x6c   : > { %vm404_vm3 = vcmp.ne.s32.totalorder %v372_v33, 0  ;;  %v375_v40 = vunpack.c.0.s8 %v343_v34  ;;  %v374_v41 = vunpack.c.0.s8 %v342_v35  ;;  %v345_v42 = vsel %vm281_vm0, 16843009, %v914_v0  ;;  %v296_v33 = vld [vmem:[%s1037_s8 + $0x50] sm:$0xff] }
  0x6d   : > { %v344_v43 = vsel %vm280_vm1, 16843009, %v914_v0  ;;  %vm283_vm4 = vnez %v251_v38  ;;  %vm282_vm5 = vnez %v250_v39  ;;  %v437_v44 = vsel %vm405_vm2, 1, %v914_v0  ;;  %v299_v38 = vld [vmem:[%s1037_s8 + $0x68] sm:$0xff]  ;;  %v298_v39 = vld [vmem:[%s1037_s8 + $0x60] sm:$0xff] }
  0x6e   : > { %v436_v45 = vsel %vm404_vm3, 1, %v914_v0  ;;  %vm407_vm6 = vcmp.ne.s32.totalorder %v375_v40, 0  ;;  %vm406_vm7 = vcmp.ne.s32.totalorder %v374_v41, 0  ;;  %v377_v48 = vunpack.c.0.s8 %v345_v42 }
  0x6f   : > { %492 = vperm.xlu1 %814, %v429_v12   ;;  %489 = vperm.xlu0 %813, %v428_v13   ;;  %v376_v49 = vunpack.c.0.s8 %v344_v43  ;;  %v347_v50 = vsel %vm283_vm4, 16843009, %v914_v0  ;;  %v346_v51 = vsel %vm282_vm5, 16843009, %v914_v0  ;;  %vm285_vm8 = vnez %v253_v46 }
  0x70   : > { %vm284_vm9 = vnez %v252_v47  ;;  %v439_v52 = vsel %vm407_vm6, 1, %v914_v0  ;;  %v438_v53 = vsel %vm406_vm7, 1, %v914_v0  ;;  %vm409_vm10 = vcmp.ne.s32.totalorder %v377_v48, 0 }
  0x71   : > { %vm408_vm11 = vcmp.ne.s32.totalorder %v376_v49, 0  ;;  %v379_v54 = vunpack.c.0.s8 %v347_v50  ;;  %v378_v55 = vunpack.c.0.s8 %v346_v51  ;;  %v349_v56 = vsel %vm285_vm8, 16843009, %v914_v0  ;;  %v303_v50 = vld [vmem:[%s1037_s8 + $0x88] sm:$0xff]  ;;  %v302_v51 = vld [vmem:[%s1037_s8 + $0x80] sm:$0xff] }
  0x72   : > { %v348_v57 = vsel %vm284_vm9, 16843009, %v914_v0  ;;  %v441_v58 = vsel %vm409_vm10, 1, %v914_v0  ;;  %v440_v59 = vsel %vm408_vm11, 1, %v914_v0  ;;  %v381_v60 = vunpack.c.0.s8 %v349_v56  ;;  %v305_v56 = vld [vmem:[%s1037_s8 + $0x98] sm:$0xff] }
  0x73   : > { %498 = vperm.xlu1 %814, %v431_v20   ;;  %495 = vperm.xlu0 %813, %v430_v21   ;;  %vm411_vm12 = vcmp.ne.s32.totalorder %v379_v54, 0  ;;  %vm410_vm13 = vcmp.ne.s32.totalorder %v378_v55, 0  ;;  %v380_v61 = vunpack.c.0.s8 %v348_v57  ;;  %v293_v20 = vld [vmem:[%s1037_s8 + $0x38] sm:$0xff]  ;;  %v292_v21 = vld [vmem:[%s1037_s8 + $0x30] sm:$0xff] }
  0x74   : > { %v443_v62 = vsel %vm411_vm12, 1, %v914_v0  ;;  %v442_v63 = vsel %vm410_vm13, 1, %v914_v0  ;;  %vm413_vm14 = vcmp.ne.s32.totalorder %v381_v60, 0  ;;  %v304_v57 = vld [vmem:[%s1037_s8 + $0x90] sm:$0xff] }
  0x75   : > { %vm412_vm15 = vcmp.ne.s32.totalorder %v380_v61, 0  ;;  %v445_v1 = vsel %vm413_vm14, 1, %v914_v0 }
  0x76   : > { %v444_v2 = vsel %vm412_vm15, 1, %v914_v0  ;;  %v289_v0 = vld [vmem:[%s1037_s8 + $0x18] sm:$0xff] }
  0x77   : > { %504 = vperm.xlu1 %814, %v433_v28   ;;  %501 = vperm.xlu0 %813, %v432_v29  }
  0x7b   : > { %510 = vperm.xlu1 %814, %v435_v36   ;;  %507 = vperm.xlu0 %813, %v434_v37  }
  0x7f   : > { %516 = vperm.xlu1 %814, %v437_v44   ;;  %513 = vperm.xlu0 %813, %v436_v45   ;;  %v301_v44 = vld [vmem:[%s1037_s8 + $0x78] sm:$0xff]  ;;  %v300_v45 = vld [vmem:[%s1037_s8 + $0x70] sm:$0xff] }
  0x83   : > { %522 = vperm.xlu1 %814, %v439_v52   ;;  %519 = vperm.xlu0 %813, %v438_v53  }
  0x87   : > { %528 = vperm.xlu1 %814, %v441_v58   ;;  %525 = vperm.xlu0 %813, %v440_v59  }
  0x8b   : > { %534 = vperm.xlu1 %814, %v443_v62   ;;  %531 = vperm.xlu0 %813, %v442_v63   ;;  %v307_v62 = vld [vmem:[%s1037_s8 + $0xa8] sm:$0xff]  ;;  %v306_v63 = vld [vmem:[%s1037_s8 + $0xa0] sm:$0xff] }
  0x8f   : > { %540 = vperm.xlu1 %814, %v445_v1   ;;  %537 = vperm.xlu0 %813, %v444_v2  }
  0xd2   : > { %v454_v5 = vpop.permute.xlu1 %453  ;;  %v448_v6 = vpop.permute.xlu0 %447 }
  0xd3   : > { %vm544_vm0 = vcmp.eq.s32.totalorder %v454_v5, 1  ;;  %vm542_vm1 = vcmp.eq.s32.totalorder %v448_v6, 1  ;;  %v309_v5 = vld [vmem:[%s1037_s8 + $0xb8] sm:$0xff]  ;;  %v308_v6 = vld [vmem:[%s1037_s8 + $0xb0] sm:$0xff] }
  0xd4   : > { %v576_v7 = vsel %vm544_vm0, %v288_v3, 0.0  ;;  %v574_v8 = vsel %vm542_vm1, %v286_v4, 0.0 }
  0xd5   : > { %608 = vst [vmem:[%s1157_s19 + $0x10] sm:$0xff] %v576_v7  ;;  %606 = vst [vmem:[%s1157_s19] sm:$0xff] %v574_v8 }
  0xd6   : > { %v457_v10 = vpop.permute.xlu1 %456  ;;  %v451_v11 = vpop.permute.xlu0 %450 }
  0xd7   : > { %vm545_vm2 = vcmp.eq.s32.totalorder %v457_v10, 1  ;;  %vm543_vm3 = vcmp.eq.s32.totalorder %v451_v11, 1  ;;  %v311_v10 = vld [vmem:[%s1037_s8 + $0xc8] sm:$0xff]  ;;  %v310_v11 = vld [vmem:[%s1037_s8 + $0xc0] sm:$0xff] }
  0xd8   : > { %v577_v12 = vsel %vm545_vm2, %v289_v0, 0.0  ;;  %v575_v13 = vsel %vm543_vm3, %v287_v9, 0.0 }
  0xd9   : > { %609 = vst [vmem:[%s1157_s19 + $0x18] sm:$0xff] %v577_v12  ;;  %607 = vst [vmem:[%s1157_s19 + $0x8] sm:$0xff] %v575_v13 }
  0xda   : > { %v463_v16 = vpop.permute.xlu1 %462  ;;  %v460_v17 = vpop.permute.xlu0 %459 }
  0xdb   : > { %vm547_vm4 = vcmp.eq.s32.totalorder %v463_v16, 1  ;;  %vm546_vm5 = vcmp.eq.s32.totalorder %v460_v17, 1  ;;  %v313_v16 = vld [vmem:[%s1037_s8 + $0xd8] sm:$0xff]  ;;  %v312_v17 = vld [vmem:[%s1037_s8 + $0xd0] sm:$0xff] }
  0xdc   : > { %v579_v18 = vsel %vm547_vm4, %v291_v14, 0.0  ;;  %v578_v19 = vsel %vm546_vm5, %v290_v15, 0.0 }
  0xdd   : > { %611 = vst [vmem:[%s1157_s19 + $0x28] sm:$0xff] %v579_v18  ;;  %610 = vst [vmem:[%s1157_s19 + $0x20] sm:$0xff] %v578_v19 }
  0xde   : > { %v469_v22 = vpop.permute.xlu1 %468  ;;  %v466_v23 = vpop.permute.xlu0 %465 }
  0xdf   : > { %vm549_vm6 = vcmp.eq.s32.totalorder %v469_v22, 1  ;;  %vm548_vm7 = vcmp.eq.s32.totalorder %v466_v23, 1  ;;  %v315_v22 = vld [vmem:[%s1037_s8 + $0xe8] sm:$0xff]  ;;  %v314_v23 = vld [vmem:[%s1037_s8 + $0xe0] sm:$0xff] }
  0xe0   : > { %v581_v24 = vsel %vm549_vm6, %v293_v20, 0.0  ;;  %v580_v25 = vsel %vm548_vm7, %v292_v21, 0.0 }
  0xe1   : > { %613 = vst [vmem:[%s1157_s19 + $0x38] sm:$0xff] %v581_v24  ;;  %612 = vst [vmem:[%s1157_s19 + $0x30] sm:$0xff] %v580_v25 }
  0xe2   : > { %v475_v28 = vpop.permute.xlu1 %474  ;;  %v472_v29 = vpop.permute.xlu0 %471 }
  0xe3   : > { %vm551_vm8 = vcmp.eq.s32.totalorder %v475_v28, 1  ;;  %vm550_vm9 = vcmp.eq.s32.totalorder %v472_v29, 1  ;;  %v317_v28 = vld [vmem:[%s1037_s8 + $0xf8] sm:$0xff]  ;;  %v316_v29 = vld [vmem:[%s1037_s8 + $0xf0] sm:$0xff] }
  0xe4   : > { %v583_v30 = vsel %vm551_vm8, %v295_v26, 0.0  ;;  %v582_v31 = vsel %vm550_vm9, %v294_v27, 0.0 }
  0xe5   : > { %615 = vst [vmem:[%s1157_s19 + $0x48] sm:$0xff] %v583_v30  ;;  %614 = vst [vmem:[%s1157_s19 + $0x40] sm:$0xff] %v582_v31 }
  0xe6   : > { %v481_v34 = vpop.permute.xlu1 %480  ;;  %v478_v35 = vpop.permute.xlu0 %477 }
  0xe7   : > { %vm553_vm10 = vcmp.eq.s32.totalorder %v481_v34, 1  ;;  %vm552_vm11 = vcmp.eq.s32.totalorder %v478_v35, 1 }
  0xe8   : > { %v585_v36 = vsel %vm553_vm10, %v297_v32, 0.0  ;;  %v584_v37 = vsel %vm552_vm11, %v296_v33, 0.0 }
  0xe9   : > { %617 = vst [vmem:[%s1157_s19 + $0x58] sm:$0xff] %v585_v36  ;;  %616 = vst [vmem:[%s1157_s19 + $0x50] sm:$0xff] %v584_v37 }
  0xea   : > { %v487_v40 = vpop.permute.xlu1 %486  ;;  %v484_v41 = vpop.permute.xlu0 %483 }
  0xeb   : > { %vm555_vm12 = vcmp.eq.s32.totalorder %v487_v40, 1  ;;  %vm554_vm13 = vcmp.eq.s32.totalorder %v484_v41, 1 }
  0xec   : > { %v587_v42 = vsel %vm555_vm12, %v299_v38, 0.0  ;;  %v586_v43 = vsel %vm554_vm13, %v298_v39, 0.0 }
  0xed   : > { %619 = vst [vmem:[%s1157_s19 + $0x68] sm:$0xff] %v587_v42  ;;  %618 = vst [vmem:[%s1157_s19 + $0x60] sm:$0xff] %v586_v43 }
  0xee   : > { %v493_v46 = vpop.permute.xlu1 %492  ;;  %v490_v47 = vpop.permute.xlu0 %489 }
  0xef   : > { %vm557_vm14 = vcmp.eq.s32.totalorder %v493_v46, 1  ;;  %vm556_vm15 = vcmp.eq.s32.totalorder %v490_v47, 1 }
  0xf0   : > { %v589_v48 = vsel %vm557_vm14, %v301_v44, 0.0  ;;  %v588_v49 = vsel %vm556_vm15, %v300_v45, 0.0 }
  0xf1   : > { %621 = vst [vmem:[%s1157_s19 + $0x78] sm:$0xff] %v589_v48  ;;  %620 = vst [vmem:[%s1157_s19 + $0x70] sm:$0xff] %v588_v49 }
  0xf2   : > { %v499_v52 = vpop.permute.xlu1 %498  ;;  %v496_v53 = vpop.permute.xlu0 %495 }
  0xf3   : > { %vm559_vm0 = vcmp.eq.s32.totalorder %v499_v52, 1  ;;  %vm558_vm1 = vcmp.eq.s32.totalorder %v496_v53, 1 }
  0xf4   : > { %v591_v54 = vsel %vm559_vm0, %v303_v50, 0.0  ;;  %v590_v55 = vsel %vm558_vm1, %v302_v51, 0.0 }
  0xf5   : > { %623 = vst [vmem:[%s1157_s19 + $0x88] sm:$0xff] %v591_v54  ;;  %622 = vst [vmem:[%s1157_s19 + $0x80] sm:$0xff] %v590_v55 }
  0xf6   : > { %v505_v58 = vpop.permute.xlu1 %504  ;;  %v502_v59 = vpop.permute.xlu0 %501 }
  0xf7   : > { %vm561_vm2 = vcmp.eq.s32.totalorder %v505_v58, 1  ;;  %vm560_vm3 = vcmp.eq.s32.totalorder %v502_v59, 1 }
  0xf8   : > { %v593_v60 = vsel %vm561_vm2, %v305_v56, 0.0  ;;  %v592_v61 = vsel %vm560_vm3, %v304_v57, 0.0 }
  0xf9   : > { %625 = vst [vmem:[%s1157_s19 + $0x98] sm:$0xff] %v593_v60  ;;  %624 = vst [vmem:[%s1157_s19 + $0x90] sm:$0xff] %v592_v61 }
  0xfa   : > { %v511_v1 = vpop.permute.xlu1 %510  ;;  %v508_v2 = vpop.permute.xlu0 %507 }
  0xfb   : > { %vm563_vm4 = vcmp.eq.s32.totalorder %v511_v1, 1  ;;  %vm562_vm5 = vcmp.eq.s32.totalorder %v508_v2, 1 }
  0xfc   : > { %v595_v3 = vsel %vm563_vm4, %v307_v62, 0.0  ;;  %v594_v4 = vsel %vm562_vm5, %v306_v63, 0.0 }
  0xfd   : > { %627 = vst [vmem:[%s1157_s19 + $0xa8] sm:$0xff] %v595_v3  ;;  %626 = vst [vmem:[%s1157_s19 + $0xa0] sm:$0xff] %v594_v4 }
  0xfe   : > { %v517_v7 = vpop.permute.xlu1 %516  ;;  %v514_v8 = vpop.permute.xlu0 %513 }
  0xff   : > { %vm565_vm6 = vcmp.eq.s32.totalorder %v517_v7, 1  ;;  %vm564_vm7 = vcmp.eq.s32.totalorder %v514_v8, 1 }
 0x100   : > { %v597_v0 = vsel %vm565_vm6, %v309_v5, 0.0  ;;  %v596_v9 = vsel %vm564_vm7, %v308_v6, 0.0 }
 0x101   : > { %629 = vst [vmem:[%s1157_s19 + $0xb8] sm:$0xff] %v597_v0  ;;  %628 = vst [vmem:[%s1157_s19 + $0xb0] sm:$0xff] %v596_v9 }
 0x102   : > { %v523_v12 = vpop.permute.xlu1 %522  ;;  %v520_v13 = vpop.permute.xlu0 %519 }
 0x103   : > { %vm567_vm8 = vcmp.eq.s32.totalorder %v523_v12, 1  ;;  %vm566_vm9 = vcmp.eq.s32.totalorder %v520_v13, 1 }
 0x104   : > { %v599_v14 = vsel %vm567_vm8, %v311_v10, 0.0  ;;  %v598_v15 = vsel %vm566_vm9, %v310_v11, 0.0 }
 0x105   : > { %631 = vst [vmem:[%s1157_s19 + $0xc8] sm:$0xff] %v599_v14  ;;  %630 = vst [vmem:[%s1157_s19 + $0xc0] sm:$0xff] %v598_v15 }
 0x106   : > { %v529_v18 = vpop.permute.xlu1 %528  ;;  %v526_v19 = vpop.permute.xlu0 %525 }
 0x107   : > { %vm569_vm10 = vcmp.eq.s32.totalorder %v529_v18, 1  ;;  %vm568_vm11 = vcmp.eq.s32.totalorder %v526_v19, 1 }
 0x108   : > { %v601_v20 = vsel %vm569_vm10, %v313_v16, 0.0  ;;  %v600_v21 = vsel %vm568_vm11, %v312_v17, 0.0 }
 0x109   : > { %633 = vst [vmem:[%s1157_s19 + $0xd8] sm:$0xff] %v601_v20  ;;  %632 = vst [vmem:[%s1157_s19 + $0xd0] sm:$0xff] %v600_v21 }
 0x10a   : > { %v535_v24 = vpop.permute.xlu1 %534  ;;  %v532_v25 = vpop.permute.xlu0 %531 }
 0x10b   : > { %vm571_vm12 = vcmp.eq.s32.totalorder %v535_v24, 1  ;;  %vm570_vm13 = vcmp.eq.s32.totalorder %v532_v25, 1  ;;  %645 = sbr.rel (!%p977_p9) target bundleno = 302 (0x12e), region = 36 }
 0x10c   : > { %v603_v26 = vsel %vm571_vm12, %v315_v22, 0.0  ;;  %v602_v27 = vsel %vm570_vm13, %v314_v23, 0.0 }
 0x10d   : > { %635 = vst [vmem:[%s1157_s19 + $0xe8] sm:$0xff] %v603_v26  ;;  %634 = vst [vmem:[%s1157_s19 + $0xe0] sm:$0xff] %v602_v27 }
 0x10e   : > { %v541_v30 = vpop.permute.xlu1 %540  ;;  %v538_v31 = vpop.permute.xlu0 %537 }
 0x10f   : > { %vm573_vm14 = vcmp.eq.s32.totalorder %v541_v30, 1  ;;  %vm572_vm15 = vcmp.eq.s32.totalorder %v538_v31, 1 }
 0x110   : > { %v605_v32 = vsel %vm573_vm14, %v317_v28, 0.0  ;;  %v604_v33 = vsel %vm572_vm15, %v316_v29, 0.0 }
 0x111   : > { %637 = vst [vmem:[%s1157_s19 + $0xf8] sm:$0xff] %v605_v32  ;;  %636 = vst [vmem:[%s1157_s19 + $0xf0] sm:$0xff] %v604_v33 }
 0x112   : > { %s1297_s22 = smov (!%p648_p6, %s647_s22), 32 }
 0x113   : > { %s1225_s23 = sshll.u32 %s1297_s22, 7 }
 0x114   : > { %s652_s24 = ssub.s32 4096, %s1225_s23 }
 0x115   : > { %653 = vsyncadd %s639_s17, %s652_s24  ;;  %p761_p13 = scmp.ne.s32.totalorder %s1225_s23, 0  ;;  %s768_s25 = sshll.u32 %s954_s13, 12 }
 0x116   : > { %s1235_s29 = scalar_lea.hbm %s1285_s2, %s768_s25  ;;  %s658_s30 = sshll.u32 %s1157_s19, 4  ;;  %s1238_s30 = int_to_ptr.vmem [resolvable:$true] %s658_s30 }
 0x117   : > { %s843_s4 = scalar_lea.vmem %s1238_s30, %s1225_s23  ;;  %s915_s7 = smov [#allocation5]  }
 0x118   : > { %p844_p9 = scmp.ne.s32.totalorder %s1238_s30, %s843_s4  ;;  %s847_s8 = sshll.u32 %s915_s7, 4  ;;  %s848_s8 = int_to_ptr.vmem [resolvable:$false] %s847_s8 }
 0x119   : > { %s849_s13 = scalar_lea.vmem %s848_s8, 8192  ;;  %p850_p0 = scmp.lt.s32.totalorder %s1238_s30, %s848_s8 }
 0x11a   : > { %p845_p11 = pnand %p844_p9, %p761_p13  ;;  %p851_p1 = scmp.lt.s32.totalorder %s849_s13, %s843_s4 }
 0x11c   : > { %p846_p12 = pneg %p845_p11  ;;  %p852_p3 = por %p851_p1, %p850_p0 }
 0x11e   : > { %p853_p4 = pnand %p852_p3, %p846_p12 }
 0x120   : > { %856 = shalt.err (!%p853_p4)
}
 0x121   : > { %s857_s26 = scalar_lea.hbm %s1235_s29, %s1225_s23  ;;  %s861_s6 = scalar_lea.hbm %s1285_s2, 16000 }
 0x122   : > { %p858_p5 = scmp.ne.s32.totalorder %s1235_s29, %s857_s26  ;;  %p862_p8 = scmp.lt.u32.totalorder %s1235_s29, %s1285_s2 }
 0x123   : > { %p863_p10 = scmp.lt.u32.totalorder %s861_s6, %s857_s26  ;;  %p865_p9 = scmp.lt.u32.totalorder %s857_s26, %s1235_s29 }
 0x124   : > { %p859_p2 = pnand %p858_p5, %p761_p13 }
 0x125   : > { %p864_p6 = por %p863_p10, %p862_p8 }
 0x126   : > { %p860_p7 = pneg %p859_p2 }
 0x127   : > { %p866_p11 = por %p865_p9, %p864_p6 }
 0x129   : > { %p867_p12 = pnand %p866_p11, %p860_p7 }
 0x12b   : > { %870 = shalt.err (!%p867_p12)
}
 0x12c   : > { %s916_s19 = smov 128   ;;  %s917_s22 = smov 8  }
 0x12d   : > { %664 = dma.vmem_to_hbm [thread:$0]  (%p761_p13), %s1238_s30, %s1225_s23, %s1235_s29, %s639_s17, %s916_s19, %s916_s19, %s917_s22  }
 0x12e PF: > { %p775_p0 = scmp.ge.s32.totalorder %s909_s12, 2  ;;  %s673_s24 = sand.u32 1, %s897_s9  }
 0x12f   : > { %p1289_p1 = scmp.ne.s32.totalorder %s1288_s21, 0  ;;  %s674_s25 = scalar_lea.sflag [#allocation4], %s673_s24 }
 0x131   : > { %p772_p3 = pnand %p775_p0, %p1289_p1 }
 0x133   : > { %892 = dma.done.wait (!%p772_p3), %s674_s25, 4096  }
 0x134   : > { %894 = vsyncadd (!%p772_p3), %s674_s25, 4294963200  ;;  %p15_p4 = scmp.ge.s32.totalorder %s958_s15, 6   ;;  %s1290_s9 = smov %s901_s10 }
 0x135   : > { %s1291_s10 = smov %s905_s11  ;;  %s1292_s11 = smov %s970_s18 }
 0x136   : > { %s1293_s12 = smov %s958_s15  ;;  %17 = sbr.rel (!%p15_p4) target bundleno = 5 (0x5), region = 76 }
 0x13d   :  { %679 = vsyncpa [#allocation3], 1 }
 0x13e   :  { %681 = vsyncpa [#allocation3 + $0x1], 1 }
 0x13f   :  { %682 = vsyncpa [#allocation4], 1 }
 0x140   :  { %684 = vsyncpa [#allocation4 + $0x1], 1 }

</bundles_post_ra>
